<compile_context>
chip_gen: v6e
topology: v6e:2x2x1
jax: 0.10.0
libtpu: 0.0.40
codegen_flags: <defaults>
</compile_context>

<pallas_src>
import math
from functools import partial

import jax
import jax.numpy as jnp
from jax.experimental import pallas as pl
from jax.experimental.pallas import tpu as pltpu


def make_pos_embedding(emb_size: int, max_len: int = 5000, dtype=jnp.float32):
    """Replicates the PyTorch buffer: pe[:, ::2]=sin, pe[:, 1::2]=cos.
    Build (and cast) once at model init, not per forward call."""
    assert emb_size % 2 == 0, "emb_size must be even (as in the PyTorch module)"
    den = jnp.exp(-jnp.arange(0, emb_size, 2, dtype=jnp.float32)
                  * (math.log(10000.0) / emb_size))                 # (E/2,)
    pos = jnp.arange(0, max_len, dtype=jnp.float32)[:, None]        # (L, 1)
    ang = pos * den[None, :]                                        # (L, E/2)
    pe = jnp.stack([jnp.sin(ang), jnp.cos(ang)], axis=-1).reshape(max_len, emb_size)
    return pe.astype(dtype)


def _pe_add_kernel(seed_ref, x_ref, pe_ref, o_ref, *, dropout_p, apply_dropout):
    # x_ref : (bt, chunk) batch-spanning tile of flattened (seq*emb) activations
    # pe_ref: (1, chunk)  matching slice of the flattened PE table (broadcast over batch)
    y = x_ref[...] + pe_ref[...]                 # native dtype, no per-step casts

    if apply_dropout:                            # static Python branch (training only)
        if dropout_p >= 1.0:                     # p == 1 drops everything exactly
            y = jnp.zeros_like(y)
        else:
            # Inverted dropout with the on-chip PRNG; seeded per grid step so every
            # tile gets an independent, deterministic mask (also under megacore
            # sharding). Not bit-identical to torch's RNG stream.
            pltpu.prng_seed(seed_ref[0], pl.program_id(0), pl.program_id(1))
            bits = pltpu.bitcast(pltpu.prng_random_bits(y.shape), jnp.uint32)
            thresh = jnp.uint32(min(int(dropout_p * 4294967296.0), 4294967295))
            keep = bits >= thresh                # keep with prob (1 - p)
            # Scale in f32 so the 1/(1-p) expectation is exact; cast on store.
            y = jnp.where(keep,
                          y.astype(jnp.float32) * jnp.float32(1.0 / (1.0 - dropout_p)),
                          jnp.float32(0.0))

    o_ref[...] = y.astype(o_ref.dtype)


def _pick_tiles(B, L, itemsize, budget_bytes):
    """Choose a (bt, chunk) block for the flattened (B, S*E) layout.

    chunk (lane axis) is a multiple of 128 unless it spans the full row, so
    stores lower to unmasked lane-dense `vst` even when E % 128 != 0.
    bt (sublane axis) is the full batch or a multiple of the dtype's sublane
    packing (8 for f32, 16 for bf16, 32 for int8/fp8)."""
    sub = {4: 8, 2: 16, 1: 32}.get(itemsize, 8)
    bt = B if B <= sub else sub
    per_row = max(128, budget_bytes // (bt * itemsize))
    chunk = L if L <= per_row else max(128, (per_row // 128) * 128)
    if chunk >= L and B > bt:
        # Short flattened rows: span more batch entries per block so per-step
        # bytes stay large enough to amortize the ~0.35 us grid-step overhead.
        rows = budget_bytes // max(1, L * itemsize)
        bt = B if rows >= B else max(sub, (rows // sub) * sub)
    return bt, chunk


def positional_encoding(x, pos_embedding, *, dropout_p=0.1, training=False, seed=0):
    """x: (B, S, E) token embeddings; pos_embedding: (max_len, E) buffer
    (ideally already in x.dtype, cast once at init)."""
    B, S, E = x.shape
    max_len, E_pe = pos_embedding.shape
    assert E_pe == E and max_len >= S

    if pos_embedding.dtype != x.dtype:
        # Fallback only; the fast path is a table pre-cast at model init.
        pos_embedding = pos_embedding.astype(x.dtype)

    itemsize = jnp.dtype(x.dtype).itemsize
    L = S * E
    # Contiguous-dim merges: layout-preserving (no HBM round trip); they make the
    # lane axis wide so small-E models still get lane-dense stores.
    x_flat = x.reshape(B, L)
    pe_flat = pos_embedding.reshape(1, max_len * E)   # full table; BlockSpec picks rows

    # Chip-aware VMEM budgeting (v7x = 64 MiB physical, v5e/v6e = 128 MiB).
    try:
        vmem_cap = int(pltpu.get_tpu_info().vmem_capacity_bytes)
    except Exception:
        vmem_cap = 64 * 1024 * 1024                   # conservative default (v7x)
    tile_budget = min(12 * 1024 * 1024, vmem_cap // 10)

    bt, chunk = _pick_tiles(B, L, itemsize, tile_budget)
    n_chunks = pl.cdiv(L, chunk)                      # ragged edge blocks are masked
    n_bt = pl.cdiv(B, bt)

    # v7x megacore: if the problem is big but fits one block, split the lane axis
    # so both TensorCores get a grid step.
    if n_chunks * n_bt == 1 and B * L * itemsize >= 4 * 1024 * 1024 and chunk >= 256:
        chunk = max(128, (((chunk + 1) // 2 + 127) // 128) * 128)
        n_chunks = pl.cdiv(L, chunk)

    tile_bytes = bt * chunk * itemsize
    # Worst case in flight: 2x x + 2x out + 2x PE tiles; keep the scoped limit
    # comfortably under the physical capacity (<= 56 MiB on v7x, ~96 MiB on v6e).
    vmem_limit = int(min(vmem_cap * 7 // 8, max(32 * 1024 * 1024, 8 * tile_bytes)))

    seed_arr = jnp.asarray([seed], dtype=jnp.int32)
    kernel = partial(_pe_add_kernel,
                     dropout_p=float(dropout_p),
                     apply_dropout=bool(training) and float(dropout_p) > 0.0)

    out_flat = pl.pallas_call(
        kernel,
        out_shape=jax.ShapeDtypeStruct((B, L), x.dtype),
        grid_spec=pltpu.PrefetchScalarGridSpec(
            num_scalar_prefetch=1,                    # dropout seed lands in SMEM
            grid=(n_chunks, n_bt),                    # batch innermost -> PE DMA elided
            in_specs=[
                # flattened activations: (bt, chunk) tile
                pl.BlockSpec((bt, chunk), lambda c, b, s: (b, c)),
                # flattened PE table: same block for every b -> fetched once per chunk
                pl.BlockSpec((1, chunk), lambda c, b, s: (0, c)),
            ],
            out_specs=pl.BlockSpec((bt, chunk), lambda c, b, s: (b, c)),
        ),
        compiler_params=pltpu.CompilerParams(
            dimension_semantics=("parallel", "parallel"),
            vmem_limit_bytes=vmem_limit),
        # TODO(synk): add input_output_aliases={1: 0} for callers that donate x.
    )(seed_arr, x_flat, pe_flat)
    return out_flat.reshape(B, S, E)


def positional_encoding_ref(x, pos_embedding):
    """Pure-JAX reference (eval mode: dropout is the identity)."""
    S = x.shape[1]
    return x + pos_embedding[:S][None, :, :].astype(x.dtype)


if __name__ == "__main__":
    B, S, E = 2, 8, 32                               # batch=2, seq=8, hidden=32
    key = jax.random.PRNGKey(0)
    x = jax.random.normal(key, (B, S, E), dtype=jnp.float32)

    # Built & cast once at "model init", exactly like the registered buffer.
    pos_embedding = make_pos_embedding(E, max_len=5000, dtype=x.dtype)

    # Eval-mode forward (nn.Dropout is the identity in eval); the training-mode
    # dropout path is implemented in-kernel via the TPU PRNG but not exercised
    # here so the check stays deterministic.
    out = positional_encoding(x, pos_embedding, dropout_p=0.1, training=False)
    out = jax.block_until_ready(out)

    ref = positional_encoding_ref(x, pos_embedding)
    assert out.shape == (B, S, E)
    assert jnp.allclose(out, ref, atol=1e-5, rtol=1e-5)

    print("KERNEL_OK")
</pallas_src>

<mosaic_0001>
module attributes {stable_mosaic.version = 11 : i64} {
  func.func @_pe_add_kernel(%arg0: i32, %arg1: i32, %arg2: memref<1xi32, #tpu.memory_space<smem>>, %arg3: memref<2x256xf32, #tpu.memory_space<vmem>>, %arg4: memref<1x256xf32, #tpu.memory_space<vmem>>, %arg5: memref<2x256xf32, #tpu.memory_space<vmem>>) attributes {dimension_semantics = [#tpu.dimension_semantics<parallel>, #tpu.dimension_semantics<parallel>], iteration_bounds = array<i64: 1, 1>, scalar_prefetch = 1 : i64, scratch_operands = 0 : i64, tpu.core_type = #tpu.core_type<tc>, window_params = [{transform_indices = @transform_0, window_bounds = array<i64: 2, 256>}, {transform_indices = @transform_1, window_bounds = array<i64: 1, 256>}, {transform_indices = @transform_2, window_bounds = array<i64: 2, 256>}]} {
    %c0 = arith.constant 0 : index
    %c0_0 = arith.constant 0 : index
    %0 = vector.load %arg3[%c0, %c0_0] : memref<2x256xf32, #tpu.memory_space<vmem>>, vector<2x256xf32>
    %c0_1 = arith.constant 0 : index
    %c0_2 = arith.constant 0 : index
    %1 = vector.load %arg4[%c0_1, %c0_2] : memref<1x256xf32, #tpu.memory_space<vmem>>, vector<1x256xf32>
    %2 = vector.broadcast %1 : vector<1x256xf32> to vector<2x256xf32>
    %3 = arith.addf %0, %2 : vector<2x256xf32>
    %c0_3 = arith.constant 0 : index
    %c0_4 = arith.constant 0 : index
    %4 = vector.load %arg5[%c0_3, %c0_4] : memref<2x256xf32, #tpu.memory_space<vmem>>, vector<2x256xf32>
    tpu.vector_store %arg5[%c0_3, %c0_4], %3 {strides = array<i32>} : memref<2x256xf32, #tpu.memory_space<vmem>>, vector<2x256xf32>,
    return
  }
  func.func @transform_0(%arg0: i32, %arg1: i32, %arg2: memref<1xi32, #tpu.memory_space<smem>>) -> (i32, i32) {
    %c0_i32 = arith.constant 0 : i32
    return %arg1, %arg0 : i32, i32
  }
  func.func @transform_1(%arg0: i32, %arg1: i32, %arg2: memref<1xi32, #tpu.memory_space<smem>>) -> (i32, i32) {
    %c0_i32 = arith.constant 0 : i32
    %c0_i32_0 = arith.constant 0 : i32
    return %c0_i32, %arg0 : i32, i32
  }
  func.func @transform_2(%arg0: i32, %arg1: i32, %arg2: memref<1xi32, #tpu.memory_space<smem>>) -> (i32, i32) {
    %c0_i32 = arith.constant 0 : i32
    return %arg1, %arg0 : i32, i32
  }
}

</mosaic_0001>

<bundles_post_ra>
// kernel: tpu_custom_call.1
= control target key start
LH: loop header
LB: loop body
LE: loop exit
PB: predicated region body
PF: predicated region fallthrough
CT: control target
= control target key end

     0   :  { %9 = vsyncpa [#allocation5], 0  ;;  %s179_s0 = inlined_call_operand.<no memory space> [shape: s32[1], index: 0, kind: input, shape index: {}]   ;;  %s180_s1 = inlined_call_operand.hbm [shape: f32[2,256], index: 1, kind: input, shape index: {}]   ;;  %s181_s2 = inlined_call_operand.hbm [shape: f32[1,160000], index: 2, kind: input, shape index: {}]   ;;  %s182_s3 = inlined_call_operand.hbm [shape: f32[2,256], index: 3, kind: output, shape index: {}]  }
   0x1   :  { %10 = vsyncpa [#allocation8], 0 }
   0x2   :  { %11 = vsyncpa [#allocation6], 0  ;;  %s146_s12 = smov [#allocation4]   ;;  %s147_s14 = smov [#allocation7]  }
   0x3   :  { %s18_s13 = sshll.u32 %s146_s12, 4  ;;  %s28_s15 = sshll.u32 %s147_s14, 4  ;;  %s19_s13 = int_to_ptr.vmem [resolvable:$true] %s18_s13  ;;  %s29_s15 = int_to_ptr.vmem [resolvable:$true] %s28_s15 }
   0x4   :  { %s88_s16 = scalar_lea.vmem %s19_s13, 64  ;;  %p93_p1 = scmp.lt.s32.totalorder %s19_s13, %s19_s13 }
   0x5   :  { %p89_p0 = scmp.ne.s32.totalorder %s19_s13, %s88_s16  ;;  %p94_p2 = scmp.lt.s32.totalorder %s88_s16, %s88_s16 }
   0x7   :  { %p95_p3 = por %p94_p2, %p93_p1 }
   0x9   :  { %p96_p4 = pnand %p95_p3, %p89_p0 }
   0xb   :  { %99 = shalt.err (!%p96_p4)
}
   0xc   :  { %21 = dma.hbm_to_vmem [thread:$0]  %s180_s1, 64, %s19_s13, [#allocation5]  }
   0xd   :  { %s108_s18 = scalar_lea.vmem %s29_s15, 32  ;;  %p113_p6 = scmp.lt.s32.totalorder %s29_s15, %s29_s15 }
   0xe   :  { %p109_p5 = scmp.ne.s32.totalorder %s29_s15, %s108_s18  ;;  %p114_p7 = scmp.lt.s32.totalorder %s108_s18, %s108_s18 }
  0x10   :  { %p115_p8 = por %p114_p7, %p113_p6 }
  0x12   :  { %p116_p9 = pnand %p115_p8, %p109_p5 }
  0x14   :  { %119 = shalt.err (!%p116_p9)
}
  0x15   :  { %31 = dma.hbm_to_vmem [thread:$0]  %s181_s2, 32, %s29_s15, [#allocation8]  }
  0x16   :  { %140 = dma.done.wait [#allocation5], 64  }
  0x17   :  { %141 = vsyncadd [#allocation5], 4294967232 }
  0x18   :  { %142 = dma.done.wait [#allocation8], 32  }
  0x19   :  { %143 = vsyncadd [#allocation8], 4294967264  ;;  %v41_v0 = vlaneseq  ;;  %v148_v1 = vmov 1983009808   ;;  %v39_v7 = vld [vmem:[#allocation7] sm:$0x3] }
  0x1a   :  { %v51_v2 = vunpack.c.l.s4 %v148_v1  ;;  %v38_v12 = vld [vmem:[#allocation4] sm:$0xf]  ;;  %s149_s1 = smov [#allocation9]  }
  0x1b   :  { %v42_v3 = vshrl.u32 %v41_v0, 7  ;;  %s66_s21 = sshll.u32 %s149_s1, 4  ;;  %s67_s21 = int_to_ptr.vmem [resolvable:$true] %s66_s21 }
  0x1c   :  { %v52_v6 = vunpack.c.0.s8 %v51_v2  ;;  %s120_s2 = scalar_lea.vmem %s67_s21, 64  ;;  %p125_p11 = scmp.lt.s32.totalorder %s67_s21, %s67_s21 }
  0x1d   :  { %v43_v4 = vsub.s32 0, %v42_v3  ;;  %v47_v5 = vsub.s32 1, %v42_v3  ;;  %p121_p10 = scmp.ne.s32.totalorder %s67_s21, %s120_s2  ;;  %p126_p12 = scmp.lt.s32.totalorder %s120_s2, %s120_s2 }
  0x1e   :  { %v55_v10 = vsub.s32 %v52_v6, %v42_v3 }
  0x1f   :  { %v44_v8 = vrot.slane %v39_v7, %v43_v4  ;;  %v48_v9 = vrot.slane %v39_v7, %v47_v5  ;;  %p127_p13 = por %p126_p12, %p125_p11 }
  0x21   :  { %v49_v11 = vcombine.low %v44_v8, %v48_v9  ;;  %p128_p0 = pnand %p127_p13, %p121_p10 }
  0x23   :  { %v56_v13 = vrot.slane %v49_v11, %v55_v10 }
  0x25   :  { %v58_v14 = vadd.f32 %v56_v13, %v38_v12 }
  0x27   :  { %59 = vst [vmem:[#allocation9] sm:$0xf] %v58_v14 }
  0x28   :  { %131 = shalt.err (!%p128_p0)
}
  0x29   :  { %69 = dma.vmem_to_hbm [thread:$0]  %s67_s21, 64, %s182_s3, [#allocation6]  }
  0x2a   :  { %144 = dma.done.wait [#allocation6], 64  }
  0x2b   :  { %145 = vsyncadd [#allocation6], 4294967232 }
  0x2c   :  { %73 = vsyncpa [#allocation5], 1 }
  0x2d   :  { %74 = vsyncpa [#allocation8], 1 }
  0x2e   :  { %75 = vsyncpa [#allocation6], 1 }

</bundles_post_ra>
